<compile_context>
chip_gen: v7x
topology: tpu7x:2x2x1
jax: 0.10.0
libtpu: 0.0.40
codegen_flags: <defaults>
</compile_context>

<pallas_src>
import math

import jax
import jax.numpy as jnp
import numpy as np
from jax.experimental import pallas as pl
from jax.experimental.pallas import tpu as pltpu

# ---- static model configuration (small, consistent with the module) --------
N_HEAD = 1
DQ = 16          # dim_q
DK = 16          # dim_k  (must equal DQ for qs @ ks^T)
DV = 16          # dim_v
DO = 32          # dim_o
DT = DQ + DK + DV            # dim_total = 48
B = 2                        # batch
S = DT // DV                 # seq len; module requires S*DV == n_head*dim_total -> S = 3
SCALE = 1.0 / math.sqrt(DQ)
NEG_FILL = -1000000000.0


def _model_kernel(q_ref, w_ref, mask_ref, pw_ref, out_ref):
    """Whole forward pass for the (tiny) problem in one VMEM-resident kernel.

    q_ref:    (B, S, DQ)    input sequence
    w_ref:    (DQ, DT)      fused Wqkv^T (all three projections in one matmul)
    mask_ref: (S, S)        additive attention mask (broadcast over batch here)
    pw_ref:   (S*DV, DO)    proj weight transposed (flatten order matches torch)
    out_ref:  (B, DO)
    """
    q = q_ref[...]                                                   # f32 already

    # Fused qkv projection: one MXU pass producing all DT=48 output lanes.
    qkv = jax.lax.dot_general(q, w_ref[...], (((2,), (0,)), ((), ())),
                              preferred_element_type=jnp.float32)    # (B,S,DT)
    qs = qkv[:, :, :DQ]                                              # (B,S,DQ)
    ks = qkv[:, :, DQ:DQ + DK]                                       # (B,S,DK)
    vs = qkv[:, :, DQ + DK:]                                         # (B,S,DV)

    # scores
    at = jnp.einsum("bsq,btq->bst", qs, ks,
                    preferred_element_type=jnp.float32) * SCALE      # (B,S,S)

    mask = jnp.broadcast_to(mask_ref[...], (B, S, S))                # one broadcast, reused
    at = at + mask

    # at / clamp(sum(at, -1, keepdim=True), min=0)  -> EUP reciprocal (free slot)
    denom = jnp.maximum(jnp.sum(at, axis=-1, keepdims=True), 0.0)
    at = at * pl.reciprocal(denom, approx=True)

    # masked_fill(mask.bool(), -1e9)
    at = jnp.where(mask != 0.0, jnp.float32(NEG_FILL), at)

    # context
    vout = jnp.einsum("bst,btv->bsv", at, vs,
                      preferred_element_type=jnp.float32)            # (B,S,DV)

    # flatten(S, DV) via lane-concat (no in-kernel reshape across tiles),
    # then a single (B, S*DV) x (S*DV, DO) matmul for the output projection.
    vcat = jnp.concatenate([vout[:, s, :] for s in range(S)], axis=-1)  # (B, S*DV)
    out = jnp.dot(vcat, pw_ref[...], preferred_element_type=jnp.float32)
    out_ref[...] = out.astype(out_ref.dtype)


def prepare_params(w_qkv, proj_w, attn_mask):
    """One-time parameter plumbing — hoisted out of the per-call path."""
    # torch Linear weights: w_qkv (N_HEAD*DT, DQ), proj_w (DO, N_HEAD*DT)
    w_t = jnp.transpose(w_qkv).astype(jnp.float32)        # (DQ, DT)
    pw_t = jnp.transpose(proj_w).astype(jnp.float32)      # (S*DV, DO); row idx = s*DV+v
    mask = attn_mask.astype(jnp.float32)                  # (S, S)
    return w_t, pw_t, mask


@jax.jit
def model_forward(q, k, v, w_t, pw_t, mask):
    """Per-call path: nothing but the pallas_call (params already prepared)."""
    del k, v  # only used for .size(0) in the original module
    return pl.pallas_call(
        _model_kernel,
        out_shape=jax.ShapeDtypeStruct((B, DO), jnp.float32),
        in_specs=[pl.BlockSpec(memory_space=pltpu.MemorySpace.VMEM)] * 4,
        out_specs=pl.BlockSpec(memory_space=pltpu.MemorySpace.VMEM),
    )(q, w_t, mask, pw_t)


def reference_forward(q, w_qkv, proj_w, attn_mask):
    """Pure-JAX transcription of the PyTorch forward (for verification)."""
    qkv = q @ w_qkv.T                                            # (B,S,DT)
    qs = qkv[:, :, :DQ].reshape(B, -1, DQ)
    ks = qkv[:, :, DQ:DQ + DK].reshape(B, -1, DK)
    vs = qkv[:, :, DQ + DK:].reshape(B, -1, DV)
    at = qs @ jnp.swapaxes(ks, -2, -1) / math.sqrt(DQ)
    at = at + attn_mask
    at = at / jnp.maximum(at.sum(-1, keepdims=True), 0.0)
    at = jnp.where(attn_mask.astype(bool), NEG_FILL, at)
    v_out = at @ vs
    v_out = v_out.reshape(B, -1)
    return v_out @ proj_w.T


if __name__ == "__main__":
    key = jax.random.PRNGKey(0)
    kq, kk, kv, kw1, kw2 = jax.random.split(key, 5)

    # inputs (batch, seq, feature)
    q = jax.random.uniform(kq, (B, S, DQ), dtype=jnp.float32)
    k = jax.random.uniform(kk, (B, S, DK), dtype=jnp.float32)
    v = jax.random.uniform(kv, (B, S, DV), dtype=jnp.float32)

    # deterministic parameters (torch Linear convention: (out, in))
    w_qkv = 0.05 * jax.random.normal(kw1, (N_HEAD * DT, DQ), dtype=jnp.float32)
    proj_w = 0.05 * jax.random.normal(kw2, (DO, N_HEAD * DT), dtype=jnp.float32)

    # attn_mask: ones off the diagonal (keeps the row-sum denominator positive)
    attn_mask = (1.0 - jnp.eye(S, dtype=jnp.float32))

    # one-time parameter preparation (NOT on the per-step path)
    w_t, pw_t, mask = prepare_params(w_qkv, proj_w, attn_mask)

    out = model_forward(q, k, v, w_t, pw_t, mask)
    out = jax.block_until_ready(out)

    ref = reference_forward(q, w_qkv, proj_w, attn_mask)
    assert out.shape == (B, DO)
    assert np.allclose(np.asarray(out), np.asarray(ref), rtol=1e-2, atol=1e-2), (
        "mismatch vs reference")

    print("KERNEL_OK")
</pallas_src>

<mosaic_0001>
module attributes {stable_mosaic.version = 11 : i64} {
  func.func @_model_kernel(%arg0: memref<2x3x16xf32, #tpu.memory_space<vmem>>, %arg1: memref<16x48xf32, #tpu.memory_space<vmem>>, %arg2: memref<3x3xf32, #tpu.memory_space<vmem>>, %arg3: memref<48x32xf32, #tpu.memory_space<vmem>>, %arg4: memref<2x32xf32, #tpu.memory_space<vmem>>) attributes {dimension_semantics = [], scalar_prefetch = 0 : i64, scratch_operands = 0 : i64, tpu.core_type = #tpu.core_type<tc>} {
    %c0 = arith.constant 0 : index
    %c0_0 = arith.constant 0 : index
    %c0_1 = arith.constant 0 : index
    %0 = vector.load %arg0[%c0, %c0_0, %c0_1] : memref<2x3x16xf32, #tpu.memory_space<vmem>>, vector<2x3x16xf32>
    %c0_2 = arith.constant 0 : index
    %c0_3 = arith.constant 0 : index
    %1 = vector.load %arg1[%c0_2, %c0_3] : memref<16x48xf32, #tpu.memory_space<vmem>>, vector<16x48xf32>
    %cst = arith.constant dense<0.000000e+00> : vector<2x3x48xf32>
    %2 = tpu.matmul %0, %1, %cst {dimension_numbers = #tpu.dot_dimension_numbers<[2], [0], [0, 1], [1], [0, 0, 0, 1, 1, 1], [], []>} : vector<2x3x16xf32>, vector<16x48xf32>, vector<2x3x48xf32> -> vector<2x3x48xf32>
    %3 = vector.extract_strided_slice %2 {offsets = [0, 0, 0], sizes = [2, 3, 16], strides = [1, 1, 1]} : vector<2x3x48xf32> to vector<2x3x16xf32>
    %4 = vector.extract_strided_slice %2 {offsets = [0, 0, 16], sizes = [2, 3, 16], strides = [1, 1, 1]} : vector<2x3x48xf32> to vector<2x3x16xf32>
    %5 = vector.extract_strided_slice %2 {offsets = [0, 0, 32], sizes = [2, 3, 16], strides = [1, 1, 1]} : vector<2x3x48xf32> to vector<2x3x16xf32>
    "tpu.trace_start"() <{level = 10 : i32, message = "bsq,btq->bst"}> : () -> ()
    %cst_4 = arith.constant dense<0.000000e+00> : vector<2x3x3xf32>
    %6 = tpu.matmul %3, %4, %cst_4 {dimension_numbers = #tpu.dot_dimension_numbers<[2], [2], [1], [1], [0, 0, 0, 1, 1, 1], [0], [0]>} : vector<2x3x16xf32>, vector<2x3x16xf32>, vector<2x3x3xf32> -> vector<2x3x3xf32>
    "tpu.trace_stop"() : () -> ()
    %cst_5 = arith.constant 2.500000e-01 : f32
    %7 = vector.broadcast %cst_5 : f32 to vector<2x3x3xf32>
    %8 = arith.mulf %6, %7 : vector<2x3x3xf32>
    %c0_6 = arith.constant 0 : index
    %c0_7 = arith.constant 0 : index
    %9 = vector.load %arg2[%c0_6, %c0_7] : memref<3x3xf32, #tpu.memory_space<vmem>>, vector<3x3xf32>
    %10 = vector.shape_cast %9 : vector<3x3xf32> to vector<1x3x3xf32>
    %11 = vector.broadcast %10 : vector<1x3x3xf32> to vector<2x3x3xf32>
    %12 = arith.addf %8, %11 : vector<2x3x3xf32>
    %cst_8 = arith.constant dense<0.000000e+00> : vector<2x3xf32>
    %13 = vector.multi_reduction <add>, %12, %cst_8 [2] : vector<2x3x3xf32> to vector<2x3xf32>
    %14 = vector.shape_cast %13 : vector<2x3xf32> to vector<2x3x1xf32>
    %cst_9 = arith.constant 0.000000e+00 : f32
    %15 = vector.broadcast %cst_9 : f32 to vector<2x3x1xf32>
    %16 = arith.maximumf %14, %15 : vector<2x3x1xf32>
    %17 = tpu.reciprocal %16 {approx = true} : vector<2x3x1xf32> -> vector<2x3x1xf32>
    %18 = vector.broadcast %17 : vector<2x3x1xf32> to vector<2x3x3xf32>
    %19 = arith.mulf %12, %18 : vector<2x3x3xf32>
    %cst_10 = arith.constant 0.000000e+00 : f32
    %20 = vector.broadcast %cst_10 : f32 to vector<2x3x3xf32>
    %21 = arith.cmpf one, %11, %20 : vector<2x3x3xf32>
    %cst_11 = arith.constant -1.000000e+09 : f32
    %22 = vector.broadcast %cst_11 : f32 to vector<2x3x3xf32>
    %23 = arith.select %21, %22, %19 : vector<2x3x3xi1>, vector<2x3x3xf32>
    "tpu.trace_start"() <{level = 10 : i32, message = "bst,btv->bsv"}> : () -> ()
    %cst_12 = arith.constant dense<0.000000e+00> : vector<2x3x16xf32>
    %24 = tpu.matmul %23, %5, %cst_12 {dimension_numbers = #tpu.dot_dimension_numbers<[2], [1], [1], [2], [0, 0, 0, 1, 1, 2], [0], [0]>} : vector<2x3x3xf32>, vector<2x3x16xf32>, vector<2x3x16xf32> -> vector<2x3x16xf32>
    "tpu.trace_stop"() : () -> ()
    %25 = vector.extract_strided_slice %24 {offsets = [0, 0, 0], sizes = [2, 1, 16], strides = [1, 1, 1]} : vector<2x3x16xf32> to vector<2x1x16xf32>
    %26 = vector.shape_cast %25 : vector<2x1x16xf32> to vector<2x16xf32>
    %27 = vector.extract_strided_slice %24 {offsets = [0, 1, 0], sizes = [2, 1, 16], strides = [1, 1, 1]} : vector<2x3x16xf32> to vector<2x1x16xf32>
    %28 = vector.shape_cast %27 : vector<2x1x16xf32> to vector<2x16xf32>
    %29 = vector.extract_strided_slice %24 {offsets = [0, 2, 0], sizes = [2, 1, 16], strides = [1, 1, 1]} : vector<2x3x16xf32> to vector<2x1x16xf32>
    %30 = vector.shape_cast %29 : vector<2x1x16xf32> to vector<2x16xf32>
    %31 = tpu.concatenate %26, %28, %30 in 1 : vector<2x16xf32>, vector<2x16xf32>, vector<2x16xf32> -> vector<2x48xf32>
    %c0_13 = arith.constant 0 : index
    %c0_14 = arith.constant 0 : index
    %32 = vector.load %arg3[%c0_13, %c0_14] : memref<48x32xf32, #tpu.memory_space<vmem>>, vector<48x32xf32>
    %cst_15 = arith.constant dense<0.000000e+00> : vector<2x32xf32>
    %33 = tpu.matmul %31, %32, %cst_15 {dimension_numbers = #tpu.dot_dimension_numbers<[1], [0], [0], [1], [0, 0, 1, 1], [], []>} : vector<2x48xf32>, vector<48x32xf32>, vector<2x32xf32> -> vector<2x32xf32>
    %c0_16 = arith.constant 0 : index
    %c0_17 = arith.constant 0 : index
    %34 = vector.load %arg4[%c0_16, %c0_17] : memref<2x32xf32, #tpu.memory_space<vmem>>, vector<2x32xf32>
    tpu.vector_store %arg4[%c0_16, %c0_17], %33 {strides = array<i32>} : memref<2x32xf32, #tpu.memory_space<vmem>>, vector<2x32xf32>,
    return
  }
}

</mosaic_0001>

<bundles_post_ra>
// kernel: model_forward.1
= control target key start
LH: loop header
LB: loop body
LE: loop exit
PB: predicated region body
PF: predicated region fallthrough
CT: control target
= control target key end

     0   :  { %v35_v2 = vlaneseq  ;;  %v843_v3 = vmov 0.0|0.0   ;;  %vm844_vm0 = vmmov 0   ;;  %v845_v5 = vmov 0.0   ;;  %s950_s0 = inlined_call_operand.vmem [shape: f32[2,3,16], index: 0, kind: input, shape index: {}]   ;;  %s951_s1 = inlined_call_operand.vmem [shape: f32[16,48], index: 1, kind: input, shape index: {}]   ;;  %s952_s2 = inlined_call_operand.vmem [shape: f32[3,3], index: 2, kind: input, shape index: {}]   ;;  %s953_s3 = inlined_call_operand.vmem [shape: f32[48,32], index: 3, kind: input, shape index: {}]   ;;  %s954_s4 = inlined_call_operand.hbm [shape: f32[2,32], index: 4, kind: output, shape index: {}]  }
   0x1   :  { %v20_v0 = vld [vmem:[%s951_s1] sm:$0xff]  ;;  %v21_v1 = vld [vmem:[%s951_s1 + $0x8] sm:$0xff]  ;;  %794 = vmatprep.subr.bf16.mxu0 %v843_v3  ;;  %756 = vmatprep.mubr.msk.f32.mxu0 %vm844_vm0, %v845_v5  ;;  %v846_v8 = vmov 1966171168  }
   0x2   :  { %v795_v4 = vpack.c.bf16 %v21_v1, %v20_v0  ;;  %v722_v6 = vld.sshfl [vmem:[%s950_s0] sm:$0x13 pattern:$0x75316420]  ;;  %v33_v9 = vunpack.c.l.s4 %v846_v8  ;;  %v36_v10 = vshrl.u32 %v35_v2, 7  ;;  %769 = vmatprep.subr.mxu1 %v845_v5  ;;  %771 = vmatprep.mubr.msk.f32.mxu1 %vm844_vm0, %v845_v5 }
   0x3   :  { %v723_v7 = vld.sshfl [vmem:[%s950_s0 + $0x4] sm:$0x13 pattern:$0x75316420] }
   0x4   :  { %796 = vmatpush3.bf16.msra.mxu0 %v795_v4 }
   0x5   :  { %9 = vsyncpa [#allocation3], 0  ;;  %v31_v11 = vcombine.high %v722_v6, %v722_v6  ;;  %v34_v12 = vunpack.c.0.s8 %v33_v9  ;;  %v54_v13 = vcombine.high %v723_v7, %v723_v7  ;;  %759 = vmatprep.subr.mxu0 %v845_v5  ;;  %vm110_vm1 = vcmask 130048   ;;  %s847_s0 = smov 112   ;;  %s848_s1 = smov 96  }
   0x6   :  { %vm456_vm2 = vcmask 1042432   ;;  %v431_v58 = vld [vmem:[%s952_s2] sm:$0x7]  ;;  %vm434_vm3 = vcmask 18432   ;;  %vm452_vm5 = vcmask 23552   ;;  %vm609_vm6 = vcmask 1041409  }
   0x7   :  { %v37_v14 = vsub.s32 %v34_v12, %v36_v10  ;;  %vm447_vm4 = vcmp.ne.f32.partialorder %v431_v58, 0.0  ;;  %s849_s10 = smov 16   ;;  %s850_s11 = smov 32   ;;  %vm624_vm7 = vcmask 261120   ;;  %vm632_vm8 = vcmask 392192  }
   0x8   :  { %vm706_vm9 = vcmask 254976  }
   0x9   :  { %v38_v15 = vrot.slane %v722_v6, %v37_v14  ;;  %v45_v16 = vrot.slane %v31_v11, %v37_v14  ;;  %v61_v17 = vrot.slane %v723_v7, %v37_v14  ;;  %v68_v18 = vrot.slane %v54_v13, %v37_v14 }
   0xb   :  { %v46_v19 = vcombine.high %v38_v15, %v38_v15  ;;  %v69_v20 = vcombine.high %v61_v17, %v61_v17  ;;  %v70_v21 = vcombine.low %v38_v15, %v45_v16 }
   0xd   :  { %v71_v22 = vcombine.low %v46_v19, %v61_v17  ;;  %v72_v23 = vcombine.low %v68_v18, %v69_v20  ;;  %v79_v24 = vrot.slane %v70_v21, %v37_v14  ;;  %v626_v17 = vld [vmem:[%s953_s3] sm:$0xff]  ;;  %v627_v18 = vld [vmem:[%s953_s3 + $0x8] sm:$0xff]  ;;  %v628_v19 = vld [vmem:[%s953_s3 + $0x10] sm:$0xff] }
   0xe   :  { %v798_v20 = vpack.c.bf16 %v627_v18, %v626_v17  ;;  %v629_v21 = vld [vmem:[%s953_s3 + $0x18] sm:$0xff] }
   0xf   :  { %v86_v25 = vrot.slane %v71_v22, %v37_v14  ;;  %v93_v26 = vrot.slane %v72_v23, %v37_v14  ;;  %v630_v22 = vld [vmem:[%s953_s3 + $0x20] sm:$0xff]  ;;  %v631_v23 = vld [vmem:[%s953_s3 + $0x28] sm:$0xff]  ;;  %s851_s3 = smov [#allocation2]  }
  0x10   :  { %s714_s12 = sshll.u32 %s851_s3, 4  ;;  %s715_s12 = int_to_ptr.vmem [resolvable:$true] %s714_s12 }
  0x11   :  { %v94_v27 = vcombine.low %v79_v24, %v86_v25  ;;  %v108_v28 = vrot.slane %v93_v26, %v37_v14  ;;  %v804_v24 = vpack.c.bf16 %v631_v23, %v630_v22  ;;  %s819_s13 = scalar_lea.vmem %s715_s12, 32  ;;  %p824_p1 = scmp.lt.s32.totalorder %s715_s12, %s715_s12 }
  0x12   :  { %p820_p0 = scmp.ne.s32.totalorder %s715_s12, %s819_s13  ;;  %p825_p2 = scmp.lt.s32.totalorder %s819_s13, %s819_s13 }
  0x13   :  { %v101_v29 = vrot.slane %v94_v27, %v37_v14 }
  0x14   :  { %p826_p3 = por %p825_p2, %p824_p1 }
  0x15   :  { %v109_v30 = vcombine.low %v101_v29, %v108_v28 }
  0x16   :  { %p827_p4 = pnand %p826_p3, %p820_p0 }
  0x17   :  { %757 = vmatmul.mubr.msk.f32.vlgmr.msra.gmra.mrb[0].mxu0 %vm110_vm1, %v109_v30 }
  0x18   :  { %761 = vmatprep.mubr.msk.f32.mxu0 %vm844_vm0, %v845_v5 }
  0xea   :  { %v179_v31 = vpop.f32.mrb[0].mxu0 }
  0xeb   :  { %v184_v32 = vcombine.high %v179_v31, %v179_v31  ;;  %v191_v33 = vrot.slane %v179_v31, %v37_v14  ;;  %v758_v34 = vpop.f32.mrb[1].mxu0 }
  0xed   :  { %v198_v35 = vrot.slane %v184_v32, %v37_v14  ;;  %v199_v36 = vcombine.high %v191_v33, %v191_v33  ;;  %v207_v37 = vrot.slane %v191_v33, %v37_v14 }
  0xef   :  { %v200_v38 = vcombine.high %v198_v35, %v198_v35  ;;  %v221_v39 = vrot.slane %v199_v36, %v37_v14  ;;  %v229_v40 = vcombine.high %v207_v37, %v207_v37  ;;  %v214_v41 = vrot.slane %v198_v35, %v37_v14 }
  0xf1   :  { %v228_v42 = vrot.slane %v200_v38, %v37_v14  ;;  %v230_v43 = vcombine.high %v221_v39, %v221_v39  ;;  %v231_v44 = vcombine.low %v207_v37, %v221_v39  ;;  %v245_v46 = vrot.slane %v229_v40, %v37_v14 }
  0xf3   :  { %v238_v45 = vrot.slane %v231_v44, %v37_v14  ;;  %v330_v47 = vcombine.low %v230_v43, %v214_v41  ;;  %v344_v50 = vrot.slane %v228_v42, %v37_v14 }
  0xf5   :  { %v246_v48 = vcombine.low %v238_v45, %v245_v46  ;;  %v337_v49 = vrot.slane %v330_v47, %v37_v14 }
  0xf7   :  { %v253_v51 = vrot.slane %v246_v48, %v37_v14  ;;  %v345_v52 = vcombine.low %v337_v49, %v344_v50 }
  0xf9   :  { %254 = vrot.lane.b32.xlu0 %v253_v51, %s847_s0  ;;  %v352_v53 = vrot.slane %v345_v52, %v37_v14 }
  0xfd   :  { %353 = vrot.lane.b32.xlu0 %v352_v53, %s847_s0 }
 0x101   :  { %450 = vrot.lane.b32.xlu0 %v253_v51, %s848_s1 }
 0x16b   :  { %v255_v54 = vpop.permute.xlu0 %254 }
 0x16c   :  { %760 = vmatpush3.xpose.msk.msra.mxu0 %vm110_vm1, %v255_v54 }
 0x16d   :  { %764 = vmatprep.subr.mxu0 %v845_v5 }
 0x16f   :  { %762 = vmatmul.mubr.msk.f32.vlgmr.msra.gmra.mrb[2].mxu0 %vm110_vm1, %v253_v51  ;;  %v354_v55 = vpop.permute.xlu0 %353 }
 0x170   :  { %765 = vmatpush3.xpose.msk.msra.mxu0 %vm110_vm1, %v354_v55  ;;  %766 = vmatprep.mubr.msk.f32.mxu0 %vm844_vm0, %v845_v5 }
 0x171   :  { %774 = vmatprep.subr.mxu0 %v845_v5 }
 0x173   :  { %767 = vmatmul.mubr.msk.f32.vlgmr.msra.gmra.mrb[4].mxu0 %vm110_vm1, %v352_v53  ;;  %v451_v56 = vpop.permute.xlu0 %450 }
 0x174   :  { %770 = vmatpush3.msk.msra.mxu1 %vm456_vm2, %v451_v56  ;;  %776 = vmatprep.mubr.msk.f32.mxu0 %vm844_vm0, %v845_v5 }
 0x175   :  { %797 = vmatprep.subr.bf16.mxu1 %v843_v3 }
 0x242   :  { %v326_v57 = vpop.f32.mrb[2].mxu0 }
 0x243   :  { %v429_v59 = vmul.f32 0.25, %v326_v57  ;;  %v763_v60 = vpop.f32.mrb[3].mxu0 }
 0x245   :  { %v432_v61 = vadd.f32 %v431_v58, %v429_v59 }
 0x246   :  { %v425_v62 = vpop.f32.mrb[4].mxu0 }
 0x247   :  { %v430_v63 = vmul.f32 0.25, %v425_v62  ;;  %v768_v0 = vpop.f32.mrb[5].mxu0  ;;  %v435_v1 = vsel %vm434_vm3, %v432_v61, 0.0 }
 0x248   :  { %436 = vadd.xlane.f32.xlu1 %v435_v1 }
 0x249   :  { %v433_v2 = vadd.f32 %v431_v58, %v430_v63 }
 0x24b   :  { %v438_v4 = vsel %vm434_vm3, %v433_v2, 0.0 }
 0x24c   :  { %439 = vadd.xlane.f32.xlu1 %v438_v4 }
 0x25d   :  { %529 = vrot.lane.b32.xlu1 %v352_v53, %s848_s1 }
 0x2d5   :  { %v437_v6 = vpop.xlane.xlu1 %436 }
 0x2d6   :  { %v441_v7 = vmax.f32 %v437_v6, 0.0 }
 0x2d8   :  { %815 = vrcp.f32 %v441_v7 }
 0x2d9   :  { %v440_v8 = vpop.xlane.xlu1 %439 }
 0x2da   :  { %v442_v9 = vmax.f32 %v440_v8, 0.0 }
 0x2dc   :  { %817 = vrcp.f32 %v442_v9 }
 0x2dd   :  { %v530_v10 = vpop.permute.xlu1 %529 }
 0x2de   :  { %775 = vmatpush3.msk.msra.mxu0 %vm456_vm2, %v530_v10 }
 0x2e2   :  { %v816_v11 = vpop.eup %815 }
 0x2e3   :  { %v445_v12 = vmul.f32 %v816_v11, %v432_v61 }
 0x2e5   :  { %v448_v13 = vsel %vm447_vm4, -1e+09, %v445_v12 }
 0x2e6   :  { %v818_v14 = vpop.eup %817  ;;  %772 = vmatmul.mubr.msk.f32.vlgmr.msra.gmra.mrb[0].mxu1 %vm452_vm5, %v448_v13 }
 0x2e7   :  { %v446_v15 = vmul.f32 %v818_v14, %v433_v2  ;;  %791 = vmatprep.mubr.msk.f32.mxu1 %vm844_vm0, %v845_v5  ;;  %799 = vmatpush3.bf16.msra.mxu1 %v798_v20  ;;  %v801_v5 = vpack.c.bf16 %v629_v21, %v628_v19 }
 0x2e8   :  { %800 = vmatprep.subr.bf16.mxu1 %v843_v3 }
 0x2e9   :  { %v449_v16 = vsel %vm447_vm4, -1e+09, %v446_v15 }
 0x2ea   :  { %777 = vmatmul.mubr.msk.f32.vlgmr.msra.gmra.mrb[6].mxu0 %vm452_vm5, %v449_v16 }
 0x2eb   :  { %802 = vmatpush3.bf16.msra.mxu1 %v801_v5 }
 0x2ec   :  { %803 = vmatprep.subr.bf16.mxu1 %v843_v3 }
 0x2ef   :  { %805 = vmatpush3.bf16.msra.mxu1 %v804_v24 }
 0x3b9   :  { %v525_v25 = vpop.f32.mrb[0].mxu1 }
 0x3ba   :  { %v773_v26 = vpop.f32.mrb[1].mxu1  ;;  %v612_v27 = vrot.slane %v525_v25, 1  ;;  %v617_v29 = vrot.slane %v525_v25, 2 }
 0x3bd   :  { %v602_v28 = vpop.f32.mrb[6].mxu0 }
 0x3be   :  { %v608_v30 = vrot.slane %v602_v28, 7  ;;  %v618_v31 = vrot.slane %v602_v28, 1  ;;  %v778_v32 = vpop.f32.mrb[7].mxu0  ;;  %v613_v3 = vsel %vm609_vm6, %v602_v28, %v612_v27 }
 0x3bf   :  { %614 = vrot.lane.b32.xlu0 %v613_v3, %s849_s10 }
 0x3c0   :  { %v619_v33 = vsel %vm609_vm6, %v618_v31, %v617_v29  ;;  %v610_v34 = vsel %vm609_vm6, %v608_v30, %v525_v25 }
 0x3c3   :  { %620 = vrot.lane.b32.xlu0 %v619_v33, %s850_s11 }
 0x431   :  { %v615_v35 = vpop.permute.xlu0 %614 }
 0x432   :  { %v623_v36 = vsel %vm110_vm1, %v610_v34, %v615_v35 }
 0x435   :  { %v621_v37 = vpop.permute.xlu0 %620 }
 0x436   :  { %v625_v38 = vsel %vm624_vm7, %v623_v36, %v621_v37 }
 0x437   :  { %792 = vmatmul.mubr.msk.f32.vlgmr.msra.gmra.mrb[2].mxu1 %vm632_vm8, %v625_v38 }
 0x50a   :  { %v702_v39 = vpop.f32.mrb[2].mxu1 }
 0x50b   :  { %707 = vst.msk [vmem:[#allocation2] sm:$0x3] %vm706_vm9, %v702_v39  ;;  %v793_v40 = vpop.f32.mrb[3].mxu1 }
 0x50c   :  { %830 = shalt.err (!%p827_p4)
}
 0x50d   :  { %s831_s16 = scalar_lea.hbm %s954_s4, 32 }
 0x50e   :  { %p832_p5 = scmp.ne.s32.totalorder %s954_s4, %s831_s16  ;;  %p835_p6 = scmp.lt.u32.totalorder %s831_s16, %s954_s4 }
 0x510   :  { %p837_p7 = pnand %p835_p6, %p832_p5 }
 0x512   :  { %840 = shalt.err (!%p837_p7)
}
 0x513   :  { %717 = dma.vmem_to_hbm [thread:$0]  %s715_s12, 32, %s954_s4, [#allocation3]  }
 0x514   :  { %841 = dma.done.wait [#allocation3], 32  }
 0x515   :  { %842 = vsyncadd [#allocation3], 4294967264 }
 0x516   :  { %721 = vsyncpa [#allocation3], 1 }

</bundles_post_ra>
